<compile_context>
chip_gen: v7x
topology: tpu7x:2x2x1
jax: 0.10.0
libtpu: 0.0.40
codegen_flags: <defaults>
</compile_context>

<pallas_src>
import jax
import jax.numpy as jnp
from jax.experimental import pallas as pl
from jax.experimental.pallas import tpu as pltpu


def _round_up(x, m):
    return ((x + m - 1) // m) * m


def dueling_kernel(xt_ref, w1t_ref, b1t_ref, w2t_ref, b2t_ref, wot_ref,
                   bot_ref, out_ref):
    """Feature-major trunk + fused dueling head.

    Batch sits on the lane axis:  xt (S, TB) -> h1/h2 (H, TB) -> q (A, TB),
    so all intermediate/output stores are lane-dense.  Matmuls accumulate in
    f32; bias + ReLU epilogues stay in f32 (v5e has no bf16 VPU).
    """
    w1t = w1t_ref[...]                       # (H, S)
    w2t = w2t_ref[...]                       # (H, H)
    wot = wot_ref[...]                       # (A, H)  -- fused dueling head

    h1 = jnp.dot(w1t, xt_ref[...], preferred_element_type=jnp.float32)
    h1 = jnp.maximum(h1 + b1t_ref[...], 0.0)                       # (H, TB)

    h2 = jnp.dot(w2t, h1.astype(w2t.dtype),
                 preferred_element_type=jnp.float32)
    h2 = jnp.maximum(h2 + b2t_ref[...], 0.0)                       # (H, TB)

    q = jnp.dot(wot, h2.astype(wot.dtype),
                preferred_element_type=jnp.float32)
    out_ref[...] = q + bot_ref[...]                                # (A, TB)


def fuse_head_params(params, state_dim, compute_dtype=jnp.bfloat16):
    """One-time fold of the dueling heads + transpose to feature-major.

    PyTorch forward:  Q = V + A - A.sum(dim=1) / x.shape[1]   (divides by the
    STATE dim -- reproduced exactly).  Everything after the last ReLU is
    linear in h2, so it folds into one (hidden, action) matrix:
        wo = wa + wv - (1/state_dim) * wa.sum(axis=1, keepdims=True)
        bo = ba + bv - (1/state_dim) * ba.sum(axis=1, keepdims=True)
    Weights are returned transposed (out_dim, in_dim) and cast once to
    compute_dtype (bf16 for streaming / MXU, or f32); biases stay f32.
    """
    inv_s = 1.0 / float(state_dim)
    wo = params["wa"] + params["wv"] - inv_s * jnp.sum(
        params["wa"], axis=1, keepdims=True)                       # (H, A)
    bo = params["ba"] + params["bv"] - inv_s * jnp.sum(
        params["ba"], axis=1, keepdims=True)                       # (1, A)
    return {
        "w1t": params["w1"].T.astype(compute_dtype),               # (H, S)
        "b1t": params["b1"].T.astype(jnp.float32),                 # (H, 1)
        "w2t": params["w2"].T.astype(compute_dtype),               # (H, H)
        "b2t": params["b2"].T.astype(jnp.float32),                 # (H, 1)
        "wot": wo.T.astype(compute_dtype),                         # (A, H)
        "bot": bo.T.astype(jnp.float32),                           # (A, 1)
    }


def dueling_q_forward(x, fused, *, block_b=32 * 1024, x_transposed=False):
    """Forward pass.  x: (B, state_dim)  ->  (B, action_dim) f32 Q-values.

    Feature-major streaming: x is transposed so the batch is the 128-lane
    axis, padded to a multiple of the tile, and streamed over a 1-D
    "parallel" grid (double-buffered by BlockSpec, sharded across both
    TensorCores on v7x when the grid has >= 2 steps).  Weights/biases keep a
    constant block index and stay VMEM-resident.

    block_b: batch (lane) tile.  Default 32768 keeps the per-tile working
    set around ~20 MB, which fits the scoped-VMEM budget on v5e/v6e and the
    64 MiB per-core VMEM on v7x.  Do not exceed ~48K on v7x.
    x_transposed: pass x already as (state_dim, B) to skip the wrapper-side
    HBM transpose (cheapest if the caller can emit that layout).
    """
    stream_dtype = fused["w1t"].dtype
    H = fused["w1t"].shape[0]
    A = fused["wot"].shape[0]

    if x_transposed:
        S, B = x.shape
        xt = x.astype(stream_dtype)
    else:
        B, S = x.shape
        xt = jnp.transpose(x).astype(stream_dtype)                 # (S, B)

    # Lane tile: multiple of 128, never larger than the (padded) batch.
    tile_b = min(int(block_b), _round_up(B, 128))
    tile_b = _round_up(tile_b, 128)
    b_pad = _round_up(B, tile_b)
    n_tiles = b_pad // tile_b
    if b_pad != B:
        xt = jnp.pad(xt, ((0, 0), (0, b_pad - B)))

    # Explicit VMEM budget: double-buffered x/out tiles + f32 activations
    # (+ their compute-dtype copies) + margin for weights/compiler scratch.
    xb = jnp.dtype(stream_dtype).itemsize
    per_col = 2 * S * xb + 2 * H * 4 + 2 * H * xb + 3 * A * 4
    vmem_limit = int(per_col) * tile_b + (4 << 20)
    vmem_limit = max(16 << 20, min(vmem_limit, 96 << 20))

    args = (xt, fused["w1t"], fused["b1t"], fused["w2t"], fused["b2t"],
            fused["wot"], fused["bot"])

    def _stream_map(i):
        return (0, i)

    def _resident_map(i):
        return (0, 0)

    in_specs = [pl.BlockSpec((S, tile_b), _stream_map)]
    in_specs += [pl.BlockSpec(a.shape, _resident_map) for a in args[1:]]
    out_spec = pl.BlockSpec((A, tile_b), _stream_map)

    qt = pl.pallas_call(
        dueling_kernel,
        out_shape=jax.ShapeDtypeStruct((A, b_pad), jnp.float32),
        grid=(n_tiles,),
        in_specs=in_specs,
        out_specs=out_spec,
        compiler_params=pltpu.CompilerParams(
            dimension_semantics=("parallel",),
            vmem_limit_bytes=vmem_limit),
    )(*args)

    return jnp.transpose(qt[:, :B])                                # (B, A)


def init_params(key, state_dim, hidden_dim, action_dim):
    ks = jax.random.split(key, 8)
    scale = 0.1
    return {
        "w1": scale * jax.random.normal(ks[0], (state_dim, hidden_dim), jnp.float32),
        "b1": scale * jax.random.normal(ks[1], (1, hidden_dim), jnp.float32),
        "w2": scale * jax.random.normal(ks[2], (hidden_dim, hidden_dim), jnp.float32),
        "b2": scale * jax.random.normal(ks[3], (1, hidden_dim), jnp.float32),
        "wa": scale * jax.random.normal(ks[4], (hidden_dim, action_dim), jnp.float32),
        "ba": scale * jax.random.normal(ks[5], (1, action_dim), jnp.float32),
        "wv": scale * jax.random.normal(ks[6], (hidden_dim, 1), jnp.float32),
        "bv": scale * jax.random.normal(ks[7], (1, 1), jnp.float32),
    }


def reference_forward(x, p):
    """Pure-JAX f32 reference mirroring the PyTorch module (unfused heads)."""
    h1 = jnp.maximum(x @ p["w1"] + p["b1"], 0.0)
    h2 = jnp.maximum(h1 @ p["w2"] + p["b2"], 0.0)
    v = h2 @ p["wv"] + p["bv"]
    a = h2 @ p["wa"] + p["ba"]
    avg = (jnp.sum(a, axis=1) / x.shape[1])[:, None]
    return v + a - avg


if __name__ == "__main__":
    B, STATE_DIM, HIDDEN_DIM, ACTION_DIM = 8, 16, 32, 4

    key = jax.random.PRNGKey(0)
    kx, kp, kx2 = jax.random.split(key, 3)
    x = jax.random.normal(kx, (B, STATE_DIM), jnp.float32)
    params = init_params(kp, STATE_DIM, HIDDEN_DIM, ACTION_DIM)

    # 1) Exact-semantics check: f32 streaming, tiny batch -> one 128-lane tile.
    fused_f32 = fuse_head_params(params, STATE_DIM, compute_dtype=jnp.float32)
    out = jax.block_until_ready(dueling_q_forward(x, fused_f32))
    ref = reference_forward(x, params)
    assert out.shape == (B, ACTION_DIM)
    assert jnp.allclose(out, ref, atol=1e-4, rtol=1e-4), "f32 path mismatch vs reference"

    # 1b) Caller-provided feature-major x (skips the wrapper transpose).
    out_t = jax.block_until_ready(
        dueling_q_forward(jnp.transpose(x), fused_f32, x_transposed=True))
    assert jnp.allclose(out_t, ref, atol=1e-4, rtol=1e-4), "x_transposed path mismatch"

    # 2) bf16-streamed, multi-tile "parallel" grid with a non-multiple batch
    #    (exercises batch padding).  Small block_b only so the demo stays tiny;
    #    production uses the 32K default.
    B2 = 1000
    x2 = jax.random.normal(kx2, (B2, STATE_DIM), jnp.float32)
    fused_bf16 = fuse_head_params(params, STATE_DIM, compute_dtype=jnp.bfloat16)
    out2 = jax.block_until_ready(dueling_q_forward(x2, fused_bf16, block_b=256))
    ref2 = reference_forward(x2, params)
    assert out2.shape == (B2, ACTION_DIM)
    assert jnp.allclose(out2, ref2, atol=3e-2, rtol=0.0), "bf16 path mismatch vs reference"

    print("KERNEL_OK")
</pallas_src>

<mosaic_0001>
module attributes {stable_mosaic.version = 11 : i64} {
  func.func @dueling_kernel(%arg0: i32, %arg1: memref<16x128xf32, #tpu.memory_space<vmem>>, %arg2: memref<32x16xf32, #tpu.memory_space<vmem>>, %arg3: memref<32x1xf32, #tpu.memory_space<vmem>>, %arg4: memref<32x32xf32, #tpu.memory_space<vmem>>, %arg5: memref<32x1xf32, #tpu.memory_space<vmem>>, %arg6: memref<4x32xf32, #tpu.memory_space<vmem>>, %arg7: memref<4x1xf32, #tpu.memory_space<vmem>>, %arg8: memref<4x128xf32, #tpu.memory_space<vmem>>) attributes {dimension_semantics = [#tpu.dimension_semantics<parallel>], iteration_bounds = array<i64: 1>, scalar_prefetch = 0 : i64, scratch_operands = 0 : i64, tpu.core_type = #tpu.core_type<tc>, window_params = [{transform_indices = @transform_0, window_bounds = array<i64: 16, 128>}, {pipeline_mode = #tpu.pipeline_mode<synchronous>, transform_indices = @transform_1, window_bounds = array<i64: 32, 16>}, {pipeline_mode = #tpu.pipeline_mode<synchronous>, transform_indices = @transform_2, window_bounds = array<i64: 32, 1>}, {pipeline_mode = #tpu.pipeline_mode<synchronous>, transform_indices = @transform_3, window_bounds = array<i64: 32, 32>}, {pipeline_mode = #tpu.pipeline_mode<synchronous>, transform_indices = @transform_4, window_bounds = array<i64: 32, 1>}, {pipeline_mode = #tpu.pipeline_mode<synchronous>, transform_indices = @transform_5, window_bounds = array<i64: 4, 32>}, {pipeline_mode = #tpu.pipeline_mode<synchronous>, transform_indices = @transform_6, window_bounds = array<i64: 4, 1>}, {transform_indices = @transform_7, window_bounds = array<i64: 4, 128>}]} {
    %c0 = arith.constant 0 : index
    %c0_0 = arith.constant 0 : index
    %0 = vector.load %arg2[%c0, %c0_0] : memref<32x16xf32, #tpu.memory_space<vmem>>, vector<32x16xf32>
    %c0_1 = arith.constant 0 : index
    %c0_2 = arith.constant 0 : index
    %1 = vector.load %arg4[%c0_1, %c0_2] : memref<32x32xf32, #tpu.memory_space<vmem>>, vector<32x32xf32>
    %c0_3 = arith.constant 0 : index
    %c0_4 = arith.constant 0 : index
    %2 = vector.load %arg6[%c0_3, %c0_4] : memref<4x32xf32, #tpu.memory_space<vmem>>, vector<4x32xf32>
    %c0_5 = arith.constant 0 : index
    %c0_6 = arith.constant 0 : index
    %3 = vector.load %arg1[%c0_5, %c0_6] : memref<16x128xf32, #tpu.memory_space<vmem>>, vector<16x128xf32>
    %cst = arith.constant dense<0.000000e+00> : vector<32x128xf32>
    %4 = tpu.matmul %0, %3, %cst {dimension_numbers = #tpu.dot_dimension_numbers<[1], [0], [0], [1], [0, 0, 1, 1], [], []>} : vector<32x16xf32>, vector<16x128xf32>, vector<32x128xf32> -> vector<32x128xf32>
    %c0_7 = arith.constant 0 : index
    %c0_8 = arith.constant 0 : index
    %5 = vector.load %arg3[%c0_7, %c0_8] : memref<32x1xf32, #tpu.memory_space<vmem>>, vector<32x1xf32>
    %6 = vector.broadcast %5 : vector<32x1xf32> to vector<32x128xf32>
    %7 = arith.addf %4, %6 : vector<32x128xf32>
    %cst_9 = arith.constant 0.000000e+00 : f32
    %8 = vector.broadcast %cst_9 : f32 to vector<32x128xf32>
    %9 = arith.maximumf %7, %8 : vector<32x128xf32>
    %cst_10 = arith.constant dense<0.000000e+00> : vector<32x128xf32>
    %10 = tpu.matmul %1, %9, %cst_10 {dimension_numbers = #tpu.dot_dimension_numbers<[1], [0], [0], [1], [0, 0, 1, 1], [], []>} : vector<32x32xf32>, vector<32x128xf32>, vector<32x128xf32> -> vector<32x128xf32>
    %c0_11 = arith.constant 0 : index
    %c0_12 = arith.constant 0 : index
    %11 = vector.load %arg5[%c0_11, %c0_12] : memref<32x1xf32, #tpu.memory_space<vmem>>, vector<32x1xf32>
    %12 = vector.broadcast %11 : vector<32x1xf32> to vector<32x128xf32>
    %13 = arith.addf %10, %12 : vector<32x128xf32>
    %cst_13 = arith.constant 0.000000e+00 : f32
    %14 = vector.broadcast %cst_13 : f32 to vector<32x128xf32>
    %15 = arith.maximumf %13, %14 : vector<32x128xf32>
    %cst_14 = arith.constant dense<0.000000e+00> : vector<4x128xf32>
    %16 = tpu.matmul %2, %15, %cst_14 {dimension_numbers = #tpu.dot_dimension_numbers<[1], [0], [0], [1], [0, 0, 1, 1], [], []>} : vector<4x32xf32>, vector<32x128xf32>, vector<4x128xf32> -> vector<4x128xf32>
    %c0_15 = arith.constant 0 : index
    %c0_16 = arith.constant 0 : index
    %17 = vector.load %arg7[%c0_15, %c0_16] : memref<4x1xf32, #tpu.memory_space<vmem>>, vector<4x1xf32>
    %18 = vector.broadcast %17 : vector<4x1xf32> to vector<4x128xf32>
    %19 = arith.addf %16, %18 : vector<4x128xf32>
    %c0_17 = arith.constant 0 : index
    %c0_18 = arith.constant 0 : index
    %20 = vector.load %arg8[%c0_17, %c0_18] : memref<4x128xf32, #tpu.memory_space<vmem>>, vector<4x128xf32>
    tpu.vector_store %arg8[%c0_17, %c0_18], %19 {strides = array<i32>} : memref<4x128xf32, #tpu.memory_space<vmem>>, vector<4x128xf32>,
    return
  }
  func.func @transform_0(%arg0: i32) -> (i32, i32) {
    %c0_i32 = arith.constant 0 : i32
    %c0_i32_0 = arith.constant 0 : i32
    return %c0_i32, %arg0 : i32, i32
  }
  func.func @transform_1(%arg0: i32) -> (i32, i32) {
    %c0_i32 = arith.constant 0 : i32
    %c0_i32_0 = arith.constant 0 : i32
    %c0_i32_1 = arith.constant 0 : i32
    return %c0_i32, %c0_i32_0 : i32, i32
  }
  func.func @transform_2(%arg0: i32) -> (i32, i32) {
    %c0_i32 = arith.constant 0 : i32
    %c0_i32_0 = arith.constant 0 : i32
    %c0_i32_1 = arith.constant 0 : i32
    return %c0_i32, %c0_i32_0 : i32, i32
  }
  func.func @transform_3(%arg0: i32) -> (i32, i32) {
    %c0_i32 = arith.constant 0 : i32
    %c0_i32_0 = arith.constant 0 : i32
    %c0_i32_1 = arith.constant 0 : i32
    return %c0_i32, %c0_i32_0 : i32, i32
  }
  func.func @transform_4(%arg0: i32) -> (i32, i32) {
    %c0_i32 = arith.constant 0 : i32
    %c0_i32_0 = arith.constant 0 : i32
    %c0_i32_1 = arith.constant 0 : i32
    return %c0_i32, %c0_i32_0 : i32, i32
  }
  func.func @transform_5(%arg0: i32) -> (i32, i32) {
    %c0_i32 = arith.constant 0 : i32
    %c0_i32_0 = arith.constant 0 : i32
    %c0_i32_1 = arith.constant 0 : i32
    return %c0_i32, %c0_i32_0 : i32, i32
  }
  func.func @transform_6(%arg0: i32) -> (i32, i32) {
    %c0_i32 = arith.constant 0 : i32
    %c0_i32_0 = arith.constant 0 : i32
    %c0_i32_1 = arith.constant 0 : i32
    return %c0_i32, %c0_i32_0 : i32, i32
  }
  func.func @transform_7(%arg0: i32) -> (i32, i32) {
    %c0_i32 = arith.constant 0 : i32
    %c0_i32_0 = arith.constant 0 : i32
    return %c0_i32, %arg0 : i32, i32
  }
}

</mosaic_0001>

<bundles_post_ra>
// kernel: tpu_custom_call.1
= control target key start
LH: loop header
LB: loop body
LE: loop exit
PB: predicated region body
PF: predicated region fallthrough
CT: control target
= control target key end

     0   :  { %vm62_vm0 = vcmask 130048   ;;  %v496_v4 = vmov 0   ;;  %s622_s0 = inlined_call_operand.vmem [shape: f32[16,128], index: 0, kind: input, shape index: {}]   ;;  %s623_s1 = inlined_call_operand.vmem [shape: f32[32,16], index: 1, kind: input, shape index: {}]   ;;  %s624_s2 = inlined_call_operand.vmem [shape: f32[32,1], index: 2, kind: input, shape index: {}]   ;;  %s625_s3 = inlined_call_operand.vmem [shape: f32[32,32], index: 3, kind: input, shape index: {}]   ;;  %s626_s4 = inlined_call_operand.vmem [shape: f32[32,1], index: 4, kind: input, shape index: {}]   ;;  %s627_s5 = inlined_call_operand.vmem [shape: f32[4,32], index: 5, kind: input, shape index: {}]   ;;  %s628_s6 = inlined_call_operand.vmem [shape: f32[4,1], index: 6, kind: input, shape index: {}]   ;;  %s629_s7 = inlined_call_operand.hbm [shape: f32[4,128], index: 7, kind: output, shape index: {}]  }
   0x1   :  { %v36_v0 = vld [vmem:[%s622_s0] sm:$0xff]  ;;  %v37_v1 = vld [vmem:[%s622_s0 + $0x8] sm:$0xff]  ;;  %470 = vset.pattern.permute.xlu0 %v496_v4  ;;  %471 = vset.pattern.permute.xlu1 %v496_v4  ;;  %v40_v6 = vld [vmem:[%s624_s2 + $0x10] sm:$0xff] }
   0x2   :  { %v27_v2 = vld [vmem:[%s623_s1] sm:$0xff]  ;;  %v447_v3 = vpack.c.bf16 %v37_v1, %v36_v0  ;;  %v28_v7 = vld [vmem:[%s623_s1 + $0x8] sm:$0xff]  ;;  %54 = vperm.xlu1 %471, %v40_v6   ;;  %v29_v9 = vld [vmem:[%s623_s1 + $0x10] sm:$0xff] }
   0x3   :  { %416 = vmatprep.mubr.msk.f32.mxu0 %vm62_vm0, %v27_v2  ;;  %v38_v5 = vld [vmem:[%s624_s2] sm:$0xff]  ;;  %v39_v8 = vld [vmem:[%s624_s2 + $0x8] sm:$0xff]  ;;  %v41_v10 = vld [vmem:[%s624_s2 + $0x18] sm:$0xff] }
   0x4   :  { %448 = vmatprep.subr.bf16.mxu0 %v447_v3  ;;  %44 = vperm.xlu0 %470, %v38_v5  }
   0x5   :  { %450 = vmatpush3.bf16.msra.mxu0 %v447_v3 }
   0x6   :  { %12 = vsyncpa [#allocation3], 0  ;;  %v30_v11 = vld [vmem:[%s623_s1 + $0x18] sm:$0xff]  ;;  %v164_v12 = vld [vmem:[%s626_s4] sm:$0xff]  ;;  %59 = vperm.xlu1 %471, %v41_v10   ;;  %vm188_vm1 = vcmask 261120   ;;  %v497_v39 = vmov 0.0|0.0  }
   0x7   :  { %v165_v13 = vld [vmem:[%s626_s4 + $0x8] sm:$0xff]  ;;  %v166_v14 = vld [vmem:[%s626_s4 + $0x10] sm:$0xff]  ;;  %v167_v15 = vld [vmem:[%s626_s4 + $0x18] sm:$0xff]  ;;  %459 = vmatprep.subr.bf16.mxu0 %v497_v39  ;;  %vm498_vm2 = vmmov 0   ;;  %v499_v40 = vmov 0.0   ;;  %s500_s11 = smov [#allocation2]  }
   0x8   :  { %417 = vmatmul.mubr.msk.f32.vlgmr.msra.gmra.mrb[0].mxu0 %vm62_vm0, %v28_v7  ;;  %49 = vperm.xlu0 %470, %v39_v8   ;;  %v290_v16 = vld [vmem:[%s628_s6] sm:$0xf]  ;;  %v32_v36 = vld [vmem:[%s625_s3 + $0x8] sm:$0xff]  ;;  %v33_v37 = vld [vmem:[%s625_s3 + $0x10] sm:$0xff]  ;;  %s376_s12 = sshll.u32 %s500_s11, 4  ;;  %s377_s12 = int_to_ptr.vmem [resolvable:$true] %s376_s12 }
   0x9   :  { %419 = vmatprep.mubr.msk.f32.mxu0 %vm62_vm0, %v29_v9  ;;  %v31_v17 = vld [vmem:[%s625_s3] sm:$0xff]  ;;  %v34_v38 = vld [vmem:[%s625_s3 + $0x18] sm:$0xff]  ;;  %s472_s13 = scalar_lea.vmem %s377_s12, 64  ;;  %p477_p1 = scmp.lt.s32.totalorder %s377_s12, %s377_s12 }
   0xa   :  { %175 = vperm.xlu1 %471, %v165_v13   ;;  %430 = vmatprep.mubr.msk.f32.mxu1 %vm188_vm1, %v31_v17  ;;  %v35_v59 = vld [vmem:[%s627_s5] sm:$0xf]  ;;  %p473_p0 = scmp.ne.s32.totalorder %s377_s12, %s472_s13  ;;  %p478_p2 = scmp.lt.s32.totalorder %s472_s13, %s472_s13 }
   0xc   :  { %420 = vmatmul.mubr.msk.f32.gmra.mrb[2].mxu0 %vm62_vm0, %v30_v11  ;;  %170 = vperm.xlu0 %470, %v164_v12   ;;  %p479_p3 = por %p478_p2, %p477_p1 }
   0xd   :  { %444 = vmatprep.mubr.msk.f32.mxu0 %vm498_vm2, %v499_v40 }
   0xe   :  { %185 = vperm.xlu1 %471, %v167_v15   ;;  %p480_p4 = pnand %p479_p3, %p473_p0 }
  0x10   :  { %180 = vperm.xlu0 %470, %v166_v14  }
  0x14   :  { %293 = vperm.xlu0 %470, %v290_v16  }
  0x81   :  { %v55_v19 = vpop.permute.xlu1 %54 }
  0x83   :  { %v45_v18 = vpop.permute.xlu0 %44 }
  0x85   :  { %v60_v26 = vpop.permute.xlu1 %59 }
  0x87   :  { %v50_v20 = vpop.permute.xlu0 %49 }
  0x89   :  { %v176_v41 = vpop.permute.xlu1 %175 }
  0x8b   :  { %v171_v42 = vpop.permute.xlu0 %170 }
  0x8d   :  { %v186_v48 = vpop.permute.xlu1 %185 }
  0x8f   :  { %v181_v51 = vpop.permute.xlu0 %180 }
  0x93   :  { %v294_v60 = vpop.permute.xlu0 %293 }
  0xdb   :  { %v418_v21 = vpop.f32.mrb[0].mxu0 }
  0xdc   :  { %v147_v22 = vadd.f32 %v418_v21, %v50_v20  ;;  %v141_v23 = vpop.f32.mrb[1].mxu0 }
  0xdd   :  { %v142_v24 = vadd.f32 %v141_v23, %v45_v18 }
  0xde   :  { %v161_v25 = vmax.f32 %v147_v22, 0.0 }
  0xdf   :  { %v160_v27 = vmax.f32 %v142_v24, 0.0  ;;  %v421_v28 = vpop.f32.mrb[2].mxu0 }
  0xe0   :  { %v157_v29 = vadd.f32 %v421_v28, %v60_v26  ;;  %v151_v30 = vpop.f32.mrb[3].mxu0 }
  0xe1   :  { %v152_v31 = vadd.f32 %v151_v30, %v55_v19  ;;  %v451_v32 = vpack.c.bf16 %v161_v25, %v160_v27 }
  0xe2   :  { %v163_v33 = vmax.f32 %v157_v29, 0.0 }
  0xe3   :  { %v162_v34 = vmax.f32 %v152_v31, 0.0  ;;  %452 = vmatprep.subr.bf16.mxu1 %v451_v32 }
  0xe4   :  { %454 = vmatpush3.bf16.msra.mxu1 %v451_v32 }
  0xe5   :  { %v455_v35 = vpack.c.bf16 %v163_v33, %v162_v34 }
  0xe7   :  { %456 = vmatprep.subr.bf16.mxu1 %v455_v35 }
  0xe8   :  { %458 = vmatpush3.bf16.msra.mxu1 %v455_v35 }
  0xeb   :  { %431 = vmatmul.mubr.msk.f32.vlgmr.msra.gmra.mrb[0].mxu1 %vm188_vm1, %v32_v36 }
  0xec   :  { %433 = vmatprep.mubr.msk.f32.mxu1 %vm188_vm1, %v33_v37 }
  0xef   :  { %434 = vmatmul.mubr.msk.f32.gmra.mrb[2].mxu1 %vm188_vm1, %v34_v38 }
 0x1be   :  { %v432_v43 = vpop.f32.mrb[0].mxu1 }
 0x1bf   :  { %v273_v44 = vadd.f32 %v432_v43, %v176_v41  ;;  %v267_v45 = vpop.f32.mrb[1].mxu1 }
 0x1c0   :  { %v268_v46 = vadd.f32 %v267_v45, %v171_v42 }
 0x1c1   :  { %v287_v47 = vmax.f32 %v273_v44, 0.0 }
 0x1c2   :  { %v286_v49 = vmax.f32 %v268_v46, 0.0  ;;  %v435_v50 = vpop.f32.mrb[2].mxu1 }
 0x1c3   :  { %v283_v52 = vadd.f32 %v435_v50, %v186_v48  ;;  %v277_v53 = vpop.f32.mrb[3].mxu1 }
 0x1c4   :  { %v460_v54 = vpack.c.bf16 %v287_v47, %v286_v49  ;;  %v278_v55 = vadd.f32 %v277_v53, %v181_v51 }
 0x1c5   :  { %v289_v56 = vmax.f32 %v283_v52, 0.0 }
 0x1c6   :  { %v288_v57 = vmax.f32 %v278_v55, 0.0  ;;  %461 = vmatpush3.bf16.msra.mxu0 %v460_v54 }
 0x1c7   :  { %462 = vmatprep.subr.bf16.mxu0 %v497_v39 }
 0x1c8   :  { %v463_v58 = vpack.c.bf16 %v289_v56, %v288_v57 }
 0x1ca   :  { %464 = vmatpush3.bf16.msra.mxu0 %v463_v58 }
 0x1cd   :  { %445 = vmatmul.mubr.msk.f32.vlgmr.msra.gmra.mrb[4].mxu0 %vm188_vm1, %v35_v59 }
 0x2a0   :  { %v365_v61 = vpop.f32.mrb[4].mxu0 }
 0x2a1   :  { %v366_v62 = vadd.f32 %v365_v61, %v294_v60  ;;  %v446_v63 = vpop.f32.mrb[5].mxu0 }
 0x2a3   :  { %369 = vst [vmem:[#allocation2] sm:$0xf] %v366_v62 }
 0x2a4   :  { %483 = shalt.err (!%p480_p4)
}
 0x2a5   :  { %s484_s5 = scalar_lea.hbm %s629_s7, 64 }
 0x2a6   :  { %p485_p5 = scmp.ne.s32.totalorder %s629_s7, %s484_s5  ;;  %p488_p6 = scmp.lt.u32.totalorder %s484_s5, %s629_s7 }
 0x2a8   :  { %p490_p7 = pnand %p488_p6, %p485_p5 }
 0x2aa   :  { %493 = shalt.err (!%p490_p7)
}
 0x2ab   :  { %379 = dma.vmem_to_hbm [thread:$0]  %s377_s12, 64, %s629_s7, [#allocation3]  }
 0x2ac   :  { %494 = dma.done.wait [#allocation3], 64  }
 0x2ad   :  { %495 = vsyncadd [#allocation3], 4294967232 }
 0x2ae   :  { %383 = vsyncpa [#allocation3], 1 }

</bundles_post_ra>
